<compile_context>
chip_gen: v6e
topology: v6e:2x2x1
jax: 0.10.0
libtpu: 0.0.40
codegen_flags: <defaults>
</compile_context>

<pallas_src>
import math
from functools import partial

import numpy as np
import jax
import jax.numpy as jnp
from jax.experimental import pallas as pl
from jax.experimental.pallas import tpu as pltpu


# ----------------------------------------------------------------------------
# Kernel bodies
# ----------------------------------------------------------------------------

def _pe_table_kernel(freq_ref, phase_ref, o_ref, *, tile_t):
    """pe[p, c] = sin(p * freq[c] + phase[c]); phase is 0 on sin cols, pi/2 on cos cols."""
    base = pl.program_id(0) * tile_t
    pos = (base + jax.lax.broadcasted_iota(jnp.int32, (tile_t, 1), 0)).astype(jnp.float32)
    angle = pos * freq_ref[...] + phase_ref[...]          # (tile_t,1)*(1,D)+(1,D) -> (tile_t,D)
    o_ref[...] = jnp.sin(angle).astype(o_ref.dtype)       # single EUP pass


def _pe_gather_kernel(t_ref, pe_row_ref, o_ref):
    """Integer branch: the data-dependent index_map already fetched row t[i]; just copy."""
    del t_ref  # consumed by the index_maps (scalar prefetch), not by the body
    o_ref[...] = pe_row_ref[...]


def _pe_sincos_kernel(t_ref, freq_ref, phase_ref, o_ref):
    """Float branch: out[i, c] = sin(t[i] * freq[c] + phase[c]) (concat sin|cos layout)."""
    angle = t_ref[...] * freq_ref[...] + phase_ref[...]   # (tile_n,1)*(1,D)+(1,D)
    o_ref[...] = jnp.sin(angle).astype(o_ref.dtype)       # single EUP pass


# ----------------------------------------------------------------------------
# Host-precomputed frequency / phase rows (column-only, static d_model)
# ----------------------------------------------------------------------------

def _table_freq_phase(d_model):
    """Interleaved layout: col 2k -> sin(pos*f_k), col 2k+1 -> cos(pos*f_k),
    f_k = 10000^(-2k/d_model).  cos(x) == sin(x + pi/2)."""
    col = np.arange(d_model)
    two_i = (col // 2) * 2
    freq = np.exp(-(math.log(10000.0) / float(d_model)) * two_i).astype(np.float32)
    phase = np.where(col % 2 == 0, 0.0, 0.5 * np.pi).astype(np.float32)
    return jnp.asarray(freq[None, :]), jnp.asarray(phase[None, :])


def _embed_freq_phase(d_model):
    """Concat layout (float branch): [sin(t*f_0..f_{h-1}) | cos(t*f_0..f_{h-1})],
    f_k = 10000^(-k/(half-1))  (asymmetric schedule, mirrors the PyTorch module)."""
    half = d_model // 2
    denom = max(half - 1, 1)   # guard d_model == 2 (PyTorch would divide by zero)
    k = np.arange(half)
    f = np.exp(-(math.log(10000.0) / float(denom)) * k).astype(np.float32)
    freq = np.concatenate([f, f]).astype(np.float32)
    phase = np.concatenate([np.zeros(half), np.full(half, 0.5 * np.pi)]).astype(np.float32)
    return jnp.asarray(freq[None, :]), jnp.asarray(phase[None, :])


# ----------------------------------------------------------------------------
# Wrappers (module-equivalent API)
# ----------------------------------------------------------------------------

def build_pe_table(max_seq_len, d_model, dtype=jnp.float32, tile_t=512):
    """Equivalent of FlexiblePositionalEncoding._create_pe_matrix (the `pe` buffer)."""
    assert d_model % 2 == 0
    freq, phase = _table_freq_phase(d_model)
    tile_t = min(tile_t, max_seq_len)
    grid = (pl.cdiv(max_seq_len, tile_t),)
    return pl.pallas_call(
        partial(_pe_table_kernel, tile_t=tile_t),
        out_shape=jax.ShapeDtypeStruct((max_seq_len, d_model), dtype),
        grid_spec=pltpu.PrefetchScalarGridSpec(
            num_scalar_prefetch=0,
            grid=grid,
            in_specs=[pl.BlockSpec((1, d_model), lambda i: (0, 0)),
                      pl.BlockSpec((1, d_model), lambda i: (0, 0))],
            out_specs=pl.BlockSpec((tile_t, d_model), lambda i: (i, 0)),
        ),
        compiler_params=pltpu.CompilerParams(
            dimension_semantics=("parallel",),        # shards across the 2 TCs on v7x
            vmem_limit_bytes=32 << 20),
    )(freq, phase)


def _forward_int(pe_table, t):
    """Integer branch: out[i, :] = pe[t[i], :] via scalar-prefetched row DMA gather."""
    n = t.shape[0]
    T, D = pe_table.shape
    # Clamp: an out-of-range index would otherwise drive an unchecked HBM read.
    t_idx = jnp.clip(t.astype(jnp.int32), 0, T - 1)
    return pl.pallas_call(
        _pe_gather_kernel,
        out_shape=jax.ShapeDtypeStruct((n, D), pe_table.dtype),
        grid_spec=pltpu.PrefetchScalarGridSpec(
            num_scalar_prefetch=1,                    # t_idx -> SMEM, feeds index_maps
            grid=(n,),
            in_specs=[pl.BlockSpec((1, D), lambda i, t_pref: (t_pref[i], 0))],
            out_specs=pl.BlockSpec((1, D), lambda i, t_pref: (i, 0)),
        ),
        compiler_params=pltpu.CompilerParams(dimension_semantics=("arbitrary",)),
    )(t_idx, pe_table)


def _forward_float(t, d_model, tile_n=512):
    """Float branch: continuous sin|cos embedding, one fused sin pass."""
    n = t.shape[0]
    n_pad = max(8, ((n + 7) // 8) * 8)                # whole-vreg (unmasked) stores
    t_col = jnp.zeros((n_pad, 1), jnp.float32).at[:n, 0].set(t.astype(jnp.float32))
    freq, phase = _embed_freq_phase(d_model)
    tile_n = min(tile_n, n_pad)
    grid = (pl.cdiv(n_pad, tile_n),)
    # TODO(synk): if this feeds the UNet time-embedding MLP, fuse the first downstream
    # matmul into this pallas_call to avoid returning the (n, D) embedding to HBM.
    out = pl.pallas_call(
        _pe_sincos_kernel,
        out_shape=jax.ShapeDtypeStruct((n_pad, d_model), jnp.float32),
        grid_spec=pltpu.PrefetchScalarGridSpec(
            num_scalar_prefetch=0,
            grid=grid,
            in_specs=[pl.BlockSpec((tile_n, 1), lambda i: (i, 0)),
                      pl.BlockSpec((1, d_model), lambda i: (0, 0)),
                      pl.BlockSpec((1, d_model), lambda i: (0, 0))],
            out_specs=pl.BlockSpec((tile_n, d_model), lambda i: (i, 0)),
        ),
        compiler_params=pltpu.CompilerParams(
            dimension_semantics=("parallel",),
            vmem_limit_bytes=32 << 20),
    )(t_col, freq, phase)
    return out[:n]


def flexible_positional_encoding_forward(pe_table, t, *, d_model):
    """Equivalent of FlexiblePositionalEncoding.forward(t)."""
    assert d_model % 2 == 0
    if jnp.issubdtype(t.dtype, jnp.integer):
        return _forward_int(pe_table, t)
    return _forward_float(t, d_model)


# ----------------------------------------------------------------------------
# Pure-JAX references (in-script correctness checks only)
# ----------------------------------------------------------------------------

def _ref_pe_table(T, D):
    pos = jnp.arange(T, dtype=jnp.float32)[:, None]
    two_i = jnp.arange(0, D, 2, dtype=jnp.float32)[None, :]
    angle = pos / (10000.0 ** (two_i / D))
    return jnp.stack([jnp.sin(angle), jnp.cos(angle)], axis=2).reshape(T, D)


def _ref_forward_float(t, D):
    half = D // 2
    emb = math.log(10000.0) / (half - 1)
    freqs = jnp.exp(jnp.arange(half, dtype=jnp.float32) * -emb)
    ang = t[:, None] * freqs[None, :]
    return jnp.concatenate([jnp.sin(ang), jnp.cos(ang)], axis=-1)


# ----------------------------------------------------------------------------
# Main
# ----------------------------------------------------------------------------

if __name__ == "__main__":
    max_seq_len = 64
    d_model = 128        # lane-dense: d_model maps exactly onto the 128-lane axis
    batch = 8

    key = jax.random.PRNGKey(0)
    k_int, k_float = jax.random.split(key)

    # module "buffer"
    pe_table = jax.block_until_ready(build_pe_table(max_seq_len, d_model))

    # inputs for both forward branches
    t_int = jax.random.randint(k_int, (batch,), 0, max_seq_len, dtype=jnp.int32)
    t_float = jax.random.uniform(k_float, (batch,), jnp.float32, 0.0, float(max_seq_len))

    fwd = jax.jit(partial(flexible_positional_encoding_forward, d_model=d_model))
    out_int = jax.block_until_ready(fwd(pe_table, t_int))
    out_float = jax.block_until_ready(fwd(pe_table, t_float))

    # shape / sanity checks
    assert out_int.shape == (batch, d_model), out_int.shape
    assert out_float.shape == (batch, d_model), out_float.shape
    assert bool(jnp.all(jnp.isfinite(out_int)))
    assert bool(jnp.all(jnp.isfinite(out_float)))

    # numerical checks against a plain-JAX reference of the PyTorch module
    ref_table = _ref_pe_table(max_seq_len, d_model)
    assert bool(jnp.allclose(pe_table, ref_table, atol=1e-4, rtol=1e-4))
    assert bool(jnp.allclose(out_int, ref_table[t_int], atol=1e-4, rtol=1e-4))
    assert bool(jnp.array_equal(out_int, pe_table[t_int]))      # DMA gather is bit-exact
    assert bool(jnp.allclose(out_float, _ref_forward_float(t_float, d_model),
                             atol=1e-4, rtol=1e-4))

    # ragged batch (not a multiple of 8): wrapper pads to 8 sublanes and slices back
    t_ragged = t_float[:5]
    out_ragged = jax.block_until_ready(fwd(pe_table, t_ragged))
    assert out_ragged.shape == (5, d_model), out_ragged.shape
    assert bool(jnp.allclose(out_ragged, _ref_forward_float(t_ragged, d_model),
                             atol=1e-4, rtol=1e-4))

    print("KERNEL_OK")
</pallas_src>

<mosaic_0001>
module attributes {stable_mosaic.version = 11 : i64} {
  func.func @_pe_table_kernel(%arg0: i32, %arg1: memref<1x128xf32, #tpu.memory_space<vmem>>, %arg2: memref<1x128xf32, #tpu.memory_space<vmem>>, %arg3: memref<64x128xf32, #tpu.memory_space<vmem>>) attributes {dimension_semantics = [#tpu.dimension_semantics<parallel>], iteration_bounds = array<i64: 1>, scalar_prefetch = 0 : i64, scratch_operands = 0 : i64, tpu.core_type = #tpu.core_type<tc>, window_params = [{pipeline_mode = #tpu.pipeline_mode<synchronous>, transform_indices = @transform_0, window_bounds = array<i64: 1, 128>}, {pipeline_mode = #tpu.pipeline_mode<synchronous>, transform_indices = @transform_1, window_bounds = array<i64: 1, 128>}, {transform_indices = @transform_2, window_bounds = array<i64: 64, 128>}]} {
    %c64_i32 = arith.constant 64 : i32
    %0 = arith.muli %arg0, %c64_i32 : i32
    %1 = tpu.iota {dimensions = array<i32: 0>} : vector<64x1xi32>
    %2 = vector.broadcast %0 : i32 to vector<64x1xi32>
    %3 = arith.addi %2, %1 : vector<64x1xi32>
    %4 = arith.sitofp %3 : vector<64x1xi32> to vector<64x1xf32>
    %c0 = arith.constant 0 : index
    %c0_0 = arith.constant 0 : index
    %5 = vector.load %arg1[%c0, %c0_0] : memref<1x128xf32, #tpu.memory_space<vmem>>, vector<1x128xf32>
    %6 = vector.broadcast %4 : vector<64x1xf32> to vector<64x128xf32>
    %7 = vector.broadcast %5 : vector<1x128xf32> to vector<64x128xf32>
    %8 = arith.mulf %6, %7 : vector<64x128xf32>
    %c0_1 = arith.constant 0 : index
    %c0_2 = arith.constant 0 : index
    %9 = vector.load %arg2[%c0_1, %c0_2] : memref<1x128xf32, #tpu.memory_space<vmem>>, vector<1x128xf32>
    %10 = vector.broadcast %9 : vector<1x128xf32> to vector<64x128xf32>
    %11 = arith.addf %8, %10 : vector<64x128xf32>
    %12 = math.sin %11 : vector<64x128xf32>
    %c0_3 = arith.constant 0 : index
    %c0_4 = arith.constant 0 : index
    %13 = vector.load %arg3[%c0_3, %c0_4] : memref<64x128xf32, #tpu.memory_space<vmem>>, vector<64x128xf32>
    tpu.vector_store %arg3[%c0_3, %c0_4], %12 {strides = array<i32>} : memref<64x128xf32, #tpu.memory_space<vmem>>, vector<64x128xf32>,
    return
  }
  func.func @transform_0(%arg0: i32) -> (i32, i32) {
    %c0_i32 = arith.constant 0 : i32
    %c0_i32_0 = arith.constant 0 : i32
    %c0_i32_1 = arith.constant 0 : i32
    return %c0_i32, %c0_i32_0 : i32, i32
  }
  func.func @transform_1(%arg0: i32) -> (i32, i32) {
    %c0_i32 = arith.constant 0 : i32
    %c0_i32_0 = arith.constant 0 : i32
    %c0_i32_1 = arith.constant 0 : i32
    return %c0_i32, %c0_i32_0 : i32, i32
  }
  func.func @transform_2(%arg0: i32) -> (i32, i32) {
    %c0_i32 = arith.constant 0 : i32
    %c0_i32_0 = arith.constant 0 : i32
    return %arg0, %c0_i32 : i32, i32
  }
}

</mosaic_0001>

<bundles_post_ra>
// kernel: tpu_custom_call.1
= control target key start
LH: loop header
LB: loop body
LE: loop exit
PB: predicated region body
PF: predicated region fallthrough
CT: control target
= control target key end

     0   :  { %7 = vsyncpa [#allocation3], 0  ;;  %s1714_s0 = inlined_call_operand.hbm [shape: f32[1,128], index: 0, kind: input, shape index: {}]   ;;  %s1715_s1 = inlined_call_operand.vmem [shape: f32[1,128], index: 1, kind: input, shape index: {}]   ;;  %s1716_s2 = inlined_call_operand.hbm [shape: f32[64,128], index: 2, kind: output, shape index: {}]  }
   0x1   :  { %8 = vsyncpa [#allocation4], 0  ;;  %s1090_s9 = smov [#allocation2]  }
   0x2   :  { %s15_s10 = sshll.u32 %s1090_s9, 4  ;;  %s16_s10 = int_to_ptr.vmem [resolvable:$true] %s15_s10 }
   0x3   :  { %s1054_s11 = scalar_lea.vmem %s16_s10, 16  ;;  %s1058_s12 = scalar_lea.vmem %s16_s10, 32 }
   0x4   :  { %p1055_p0 = scmp.ne.s32.totalorder %s16_s10, %s1054_s11  ;;  %p1059_p1 = scmp.lt.s32.totalorder %s16_s10, %s16_s10 }
   0x5   :  { %p1060_p2 = scmp.lt.s32.totalorder %s1058_s12, %s1054_s11 }
   0x7   :  { %p1061_p3 = por %p1060_p2, %p1059_p1 }
   0x9   :  { %p1062_p4 = pnand %p1061_p3, %p1055_p0 }
   0xb   :  { %1065 = shalt.err (!%p1062_p4)
}
   0xc   :  { %18 = dma.hbm_to_vmem [thread:$0]  %s1714_s0, 16, %s16_s10, [#allocation3]  }
   0xd   :  { %1086 = dma.done.wait [#allocation3], 16  }
   0xe   :  { %1087 = vsyncadd [#allocation3], 4294967280  ;;  %v25_v0 = vlaneseq  ;;  %v938_v15 = vld [vmem:[#allocation2] ss:$0 sm:$0xff]  ;;  %v1091_v61 = vmov 683565275  }
   0xf   :  { %v1121_v16 = vld [vmem:[%s1715_s1] ss:$0 sm:$0xff]  ;;  %v1092_v63 = vmov 2475754826   ;;  %s1097_s1 = smov [#allocation5]  }
  0x10   :  { %v26_v1 = vshrl.u32 %v25_v0, 7  ;;  %s926_s16 = sshll.u32 %s1097_s1, 4  ;;  %s927_s16 = int_to_ptr.vmem [resolvable:$true] %s926_s16 }
  0x11   :  { %s1066_s17 = scalar_lea.vmem %s927_s16, 1024  ;;  %p1071_p6 = scmp.lt.s32.totalorder %s927_s16, %s927_s16 }
  0x12   :  { %v27_v2 = vadd.s32 8, %v26_v1  ;;  %v28_v3 = vadd.s32 16, %v26_v1  ;;  %v30_v4 = vadd.s32 32, %v26_v1  ;;  %v31_v5 = vadd.s32 40, %v26_v1  ;;  %p1067_p5 = scmp.ne.s32.totalorder %s927_s16, %s1066_s17  ;;  %p1072_p7 = scmp.lt.s32.totalorder %s1066_s17, %s1066_s17 }
  0x13   :  { %v32_v6 = vadd.s32 48, %v26_v1  ;;  %v33_v7 = vadd.s32 56, %v26_v1  ;;  %v43_v8 = vcvt.s32.f32 %v26_v1  ;;  %v29_v33 = vadd.s32 24, %v26_v1 }
  0x14   :  { %v44_v9 = vcvt.s32.f32 %v27_v2  ;;  %v45_v10 = vcvt.s32.f32 %v28_v3  ;;  %v47_v11 = vcvt.s32.f32 %v30_v4  ;;  %v48_v12 = vcvt.s32.f32 %v31_v5  ;;  %p1073_p8 = por %p1072_p7, %p1071_p6 }
  0x15   :  { %v49_v13 = vcvt.s32.f32 %v32_v6  ;;  %v50_v14 = vcvt.s32.f32 %v33_v7  ;;  %v58_v17 = vmul.f32 %v938_v15, %v43_v8  ;;  %v46_v42 = vcvt.s32.f32 %v29_v33 }
  0x16   :  { %v59_v18 = vmul.f32 %v938_v15, %v44_v9  ;;  %v60_v19 = vmul.f32 %v938_v15, %v45_v10  ;;  %v62_v20 = vmul.f32 %v938_v15, %v47_v11  ;;  %v63_v21 = vmul.f32 %v938_v15, %v48_v12  ;;  %p1074_p9 = pnand %p1073_p8, %p1067_p5 }
  0x17   :  { %v64_v22 = vmul.f32 %v938_v15, %v49_v13  ;;  %v65_v23 = vmul.f32 %v938_v15, %v50_v14  ;;  %v1124_v24 = vadd.f32 %v1121_v16, %v58_v17  ;;  %v1153_v50 = vmul.f32 %v938_v15, %v46_v42 }
  0x18   :  { %v1127_v25 = vadd.f32 %v1121_v16, %v59_v18  ;;  %v1130_v26 = vadd.f32 %v1121_v16, %v60_v19  ;;  %v1133_v27 = vadd.f32 %v1121_v16, %v62_v20  ;;  %v1136_v28 = vadd.f32 %v1121_v16, %v63_v21 }
  0x19   :  { %v1139_v29 = vadd.f32 %v1121_v16, %v64_v22  ;;  %v1142_v30 = vadd.f32 %v1121_v16, %v65_v23  ;;  %v81_v31 = vand.u32 2147483647, %v1124_v24  ;;  %v84_v32 = vand.u32 2139095040, %v1124_v24 }
  0x1a   :  { %v185_v34 = vand.u32 2147483647, %v1127_v25  ;;  %v188_v35 = vand.u32 2139095040, %v1127_v25  ;;  %v292_v40 = vand.u32 2139095040, %v1130_v26  ;;  %v289_v55 = vand.u32 2147483647, %v1130_v26 }
  0x1b   :  { %v85_v36 = vshrl.u32 %v84_v32, 23  ;;  %v88_v37 = vand.u32 8388607, %v81_v31  ;;  %v1093_v1 = vmov 2131351028   ;;  %vm83_vm14 = vcmp.lt.s32.totalorder %v1124_v24, 0 }
  0x1c   :  { %v189_v38 = vshrl.u32 %v188_v35, 23  ;;  %v192_v39 = vand.u32 8388607, %v185_v34  ;;  %v293_v44 = vshrl.u32 %v292_v40, 23  ;;  %v1094_v3 = vmov 2102212464  }
  0x1d   :  { %v940_v41 = vadd.s32 4294967169, %v85_v36  ;;  %v89_v46 = vor.u32 8388608, %v88_v37  ;;  %v1095_v5 = vmov 920167782   ;;  %v1096_v13 = vmov 1326507024  }
  0x1e   :  { %v944_v43 = vadd.s32 4294967169, %v189_v38  ;;  %v193_v47 = vor.u32 8388608, %v192_v39  ;;  %v948_v49 = vadd.s32 4294967169, %v293_v44 }
  0x1f   :  { %v91_v45 = vadd.s32 1, %v940_v41  ;;  %v1156_v56 = vshll.u32 %v89_v46, 8 }
  0x20   :  { %v195_v48 = vadd.s32 1, %v944_v43  ;;  %v1158_v58 = vshll.u32 %v193_v47, 8  ;;  %v1160_v59 = vadd.s32 1, %v948_v49 }
  0x21   :  { %vm92_vm0 = vcmp.gt.s32.totalorder %v91_v45, 0 }
  0x22   :  { %v93_v51 = vsel %vm92_vm0, %v91_v45, 0  ;;  %vm196_vm1 = vcmp.gt.s32.totalorder %v195_v48, 0  ;;  %vm300_vm6 = vcmp.gt.s32.totalorder %v1160_v59, 0 }
  0x23   :  { %v94_v52 = vshrl.u32 %v93_v51, 5  ;;  %v95_v53 = vand.u32 31, %v93_v51  ;;  %v197_v54 = vsel %vm196_vm1, %v195_v48, 0 }
  0x24   :  { %v199_v57 = vand.u32 31, %v197_v54  ;;  %v1167_v7 = vshrl.u32 %v197_v54, 5 }
  0x25   :  { %v96_v60 = vsub.s32 32, %v95_v53  ;;  %v98_v62 = vshll.u32 %v1091_v61, %v95_v53  ;;  %v101_v0 = vshll.u32 %v1092_v63, %v95_v53  ;;  %v104_v2 = vshll.u32 %v1093_v1, %v95_v53 }
  0x26   :  { %v107_v4 = vshll.u32 %v1094_v3, %v95_v53  ;;  %v110_v6 = vshll.u32 %v1095_v5, %v95_v53  ;;  %vm113_vm2 = vcmp.lt.s32.totalorder %v94_v52, 1  ;;  %vm114_vm3 = vcmp.lt.s32.totalorder %v94_v52, 2 }
  0x27   :  { %v97_v8 = vshrl.u32 %v1091_v61, %v96_v60  ;;  %v99_v9 = vshrl.u32 %v1092_v63, %v96_v60  ;;  %v102_v10 = vshrl.u32 %v1093_v1, %v96_v60  ;;  %v105_v11 = vshrl.u32 %v1094_v3, %v96_v60 }
  0x28   :  { %v108_v12 = vshrl.u32 %v1095_v5, %v96_v60  ;;  %v111_v14 = vshrl.u32 %v1096_v13, %v96_v60  ;;  %vm116_vm4 = vcmp.lt.s32.totalorder %v94_v52, 4  ;;  %v200_v19 = vsub.s32 32, %v199_v57 }
  0x29   :  { %v100_v15 = vor.u32 %v99_v9, %v98_v62  ;;  %v103_v17 = vor.u32 %v102_v10, %v101_v0  ;;  %v106_v18 = vor.u32 %v105_v11, %v104_v2  ;;  %vm115_vm5 = vcmp.lt.s32.totalorder %v94_v52, 3 }
  0x2a   :  { %v109_v20 = vor.u32 %v108_v12, %v107_v4  ;;  %v112_v21 = vor.u32 %v111_v14, %v110_v6  ;;  %v202_v22 = vshll.u32 %v1091_v61, %v199_v57  ;;  %v205_v39 = vshll.u32 %v1092_v63, %v199_v57 }
  0x2b   :  { %v117_v23 = vsel %vm113_vm2, %v97_v8, %v100_v15  ;;  %v118_v32 = vsel %vm116_vm4, %v106_v18, 2102212464  ;;  %v121_v33 = vsel %vm113_vm2, %v100_v15, %v103_v17  ;;  %v125_v35 = vsel %vm113_vm2, %v103_v17, %v106_v18 }
  0x2c   :  { %v119_v36 = vsel %vm115_vm5, %v103_v17, %v118_v32  ;;  %v122_v37 = vsel %vm116_vm4, %v109_v20, 920167782  ;;  %v126_v38 = vsel %vm116_vm4, %v112_v21, 1326507024  ;;  %v201_v42 = vshrl.u32 %v1091_v61, %v200_v19 }
  0x2d   :  { %v123_v40 = vsel %vm115_vm5, %v106_v18, %v122_v37  ;;  %v127_v41 = vsel %vm115_vm5, %v109_v20, %v126_v38  ;;  %v203_v43 = vshrl.u32 %v1092_v63, %v200_v19  ;;  %v120_v44 = vsel %vm114_vm3, %v117_v23, %v119_v36 }
  0x2e   :  { %v124_v45 = vsel %vm114_vm3, %v121_v33, %v123_v40  ;;  %v128_v46 = vsel %vm114_vm3, %v125_v35, %v127_v41  ;;  %v206_v47 = vshrl.u32 %v1093_v1, %v200_v19  ;;  %v208_v62 = vshll.u32 %v1093_v1, %v199_v57 }
  0x2f   :  { %v1188_v48 = vmul.u32.u64.low %v1156_v56, %v128_v46  ;;  %v1189_v49 = vmul.u32.u64.high %v1156_v56, %v128_v46, %v1188_v48  ;;  %v1192_v51 = vmul.u32.u64.low %v1156_v56, %v124_v45  ;;  %v1193_v53 = vmul.u32.u64.high %v1156_v56, %v124_v45, %v1192_v51 }
  0x30   :  { %v204_v54 = vor.u32 %v203_v43, %v202_v22  ;;  %v207_v60 = vor.u32 %v206_v47, %v205_v39  ;;  %v209_v0 = vshrl.u32 %v1094_v3, %v200_v19  ;;  %v211_v52 = vshll.u32 %v1094_v3, %v199_v57 }
  0x31   :  { %v212_v2 = vshrl.u32 %v1095_v5, %v200_v19  ;;  %v214_v4 = vshll.u32 %v1095_v5, %v199_v57  ;;  %v215_v6 = vshrl.u32 %v1096_v13, %v200_v19  ;;  %v136_v8 = vmul.u32 %v1156_v56, %v120_v44 }
  0x32   :  { %v210_v9 = vor.u32 %v209_v0, %v208_v62  ;;  %vm217_vm7 = vcmp.lt.s32.totalorder %v1167_v7, 1  ;;  %vm218_vm8 = vcmp.lt.s32.totalorder %v1167_v7, 2  ;;  %vm138_vm9 = vc.u32 %v1189_v49, %v1192_v51 }
  0x33   :  { %v139_v10 = vadd.s32 1, %v1193_v53  ;;  %v213_v11 = vor.u32 %v212_v2, %v211_v52  ;;  %vm219_vm10 = vcmp.lt.s32.totalorder %v1167_v7, 3  ;;  %v216_v12 = vor.u32 %v215_v6, %v214_v4 }
  0x34   :  { %vm220_vm11 = vcmp.lt.s32.totalorder %v1167_v7, 4  ;;  %v221_v57 = vsel %vm217_vm7, %v201_v42, %v204_v54  ;;  %v225_v14 = vsel %vm217_vm7, %v204_v54, %v207_v60  ;;  %v229_v18 = vsel %vm217_vm7, %v207_v60, %v210_v9 }
  0x35   :  { %v140_v56 = vsel %vm138_vm9, %v139_v10, %v1193_v53  ;;  %v222_v15 = vsel %vm220_vm11, %v210_v9, 2102212464  ;;  %v226_v17 = vsel %vm220_vm11, %v213_v11, 920167782  ;;  %v230_v22 = vsel %vm220_vm11, %v216_v12, 1326507024 }
  0x36   :  { %v141_v19 = vadd.s32 %v140_v56, %v136_v8  ;;  %v223_v20 = vsel %vm219_vm10, %v207_v60, %v222_v15  ;;  %v227_v21 = vsel %vm219_vm10, %v210_v9, %v226_v17  ;;  %v231_v33 = vsel %vm219_vm10, %v213_v11, %v230_v22 }
  0x37   :  { %v224_v23 = vsel %vm218_vm8, %v221_v57, %v223_v20  ;;  %v228_v32 = vsel %vm218_vm8, %v225_v14, %v227_v21  ;;  %v301_v35 = vsel %vm300_vm6, %v1160_v59, 0  ;;  %v232_v37 = vsel %vm218_vm8, %v229_v18, %v231_v33 }
  0x38   :  { %v142_v36 = vadd.s32 536870912, %v141_v19  ;;  %v1221_v38 = vmul.u32.u64.low %v1158_v58, %v228_v32  ;;  %v1222_v39 = vmul.u32.u64.high %v1158_v58, %v228_v32, %v1221_v38  ;;  %v1227_v40 = vadd.f32 %v1121_v16, %v1153_v50 }
  0x39   :  { %v1230_v41 = vmul.u32.u64.low %v1158_v58, %v232_v37  ;;  %v1231_v42 = vmul.u32.u64.high %v1158_v58, %v232_v37, %v1230_v41  ;;  %v296_v59 = vand.u32 8388607, %v289_v55  ;;  %v303_v7 = vand.u32 31, %v301_v35 }
  0x3a   :  { %v1235_v43 = vshrl.u32 %v142_v36, 30  ;;  %v240_v44 = vmul.u32 %v1158_v58, %v224_v23  ;;  %v243_v46 = vadd.s32 1, %v1222_v39  ;;  %v396_v50 = vand.u32 2139095040, %v1227_v40 }
  0x3b   :  { %v304_v47 = vsub.s32 32, %v303_v7  ;;  %vm242_vm12 = vc.u32 %v1231_v42, %v1221_v38  ;;  %v297_v16 = vor.u32 8388608, %v296_v59  ;;  %v1246_v54 = vshrl.u32 %v301_v35, 5 }
  0x3c   :  { %v144_v45 = vshll.u32 %v1235_v43, 30  ;;  %v244_v53 = vsel %vm242_vm12, %v243_v46, %v1222_v39  ;;  %v393_v60 = vand.u32 2147483647, %v1227_v40  ;;  %v306_v62 = vshll.u32 %v1091_v61, %v303_v7 }
  0x3d   :  { %v245_v58 = vadd.s32 %v244_v53, %v240_v44  ;;  %v307_v0 = vshrl.u32 %v1092_v63, %v304_v47  ;;  %v309_v52 = vshll.u32 %v1092_v63, %v303_v7  ;;  %v310_v4 = vshrl.u32 %v1093_v1, %v304_v47 }
  0x3e   :  { %v1243_v48 = vsub.s32 %v141_v19, %v144_v45  ;;  %v312_v6 = vshll.u32 %v1093_v1, %v303_v7  ;;  %v313_v8 = vshrl.u32 %v1094_v3, %v304_v47  ;;  %v315_v10 = vshll.u32 %v1094_v3, %v303_v7 }
  0x3f   :  { %v246_v9 = vadd.s32 536870912, %v245_v58  ;;  %v1257_v11 = vshll.u32 %v297_v16, 8  ;;  %v397_v12 = vshrl.u32 %v396_v50, 23  ;;  %v137_v57 = vadd.s32 %v1192_v51, %v1189_v49 }
  0x40   :  { %v147_v2 = vsub.s32 0, %v1243_v48  ;;  %v316_v56 = vshrl.u32 %v1095_v5, %v304_v47  ;;  %vm324_vm13 = vcmp.lt.s32.totalorder %v1246_v54, 4  ;;  %v305_v17 = vshrl.u32 %v1091_v61, %v304_v47 }
  0x41   :  { %v1264_v15 = vshrl.u32 %v246_v9, 30  ;;  %v318_v18 = vshll.u32 %v1095_v5, %v303_v7  ;;  %v319_v19 = vshrl.u32 %v1096_v13, %v304_v47  ;;  %v308_v21 = vor.u32 %v307_v0, %v306_v62 }
  0x42   :  { %v941_v14 = vmin.u32 %v147_v2, %v1243_v48  ;;  %v311_v22 = vor.u32 %v310_v4, %v309_v52  ;;  %v314_v49 = vor.u32 %v313_v8, %v312_v6  ;;  %v317_v23 = vor.u32 %v316_v56, %v315_v10 }
  0x43   :  { %v248_v51 = vshll.u32 %v1264_v15, 30  ;;  %vm321_vm15 = vcmp.lt.s32.totalorder %v1246_v54, 1  ;;  %vm323_vm0 = vcmp.lt.s32.totalorder %v1246_v54, 3  ;;  %v320_v33 = vor.u32 %v319_v19, %v318_v18 }
  0x44   :  { %v149_v20 = vclz %v941_v14  ;;  %v326_v35 = vsel %vm324_vm13, %v314_v49, 2102212464  ;;  %v952_v36 = vadd.s32 4294967169, %v397_v12  ;;  %v167_v37 = vsub.s32 4, %v1235_v43 }
  0x45   :  { %v1276_v39 = vsub.s32 %v245_v58, %v248_v51  ;;  %vm322_vm1 = vcmp.lt.s32.totalorder %v1246_v54, 2  ;;  %v330_v41 = vsel %vm324_vm13, %v317_v23, 920167782  ;;  %v325_v59 = vsel %vm321_vm15, %v305_v17, %v308_v21 }
  0x46   :  { %v942_v32 = vadd.s32 4294967294, %v149_v20  ;;  %v329_v7 = vsel %vm321_vm15, %v308_v21, %v311_v22  ;;  %v331_v44 = vsel %vm323_vm0, %v314_v49, %v330_v41  ;;  %v327_v47 = vsel %vm323_vm0, %v311_v22, %v326_v35 }
  0x47   :  { %v251_v46 = vsub.s32 0, %v1276_v39  ;;  %v333_v16 = vsel %vm321_vm15, %v311_v22, %v314_v49  ;;  %v334_v62 = vsel %vm324_vm13, %v320_v33, 1326507024  ;;  %v332_v52 = vsel %vm322_vm1, %v329_v7, %v331_v44 }
  0x48   :  { %vm943_vm2 = vcmp.lt.s32.totalorder %v942_v32, 0  ;;  %v335_v2 = vsel %vm323_vm0, %v317_v23, %v334_v62  ;;  %v1302_v4 = vand.u32 8388607, %v393_v60  ;;  %v403_v9 = vadd.s32 1, %v952_v36 }
  0x49   :  { %v152_v45 = vsel %vm943_vm2, 0, %v942_v32  ;;  %v945_v0 = vmin.u32 %v251_v46, %v1276_v39  ;;  %vm1308_vm3 = vcmp.le.f32.partialorder %v81_v31, 0.7853982  ;;  %v168_v12 = vsel %vm83_vm14, %v167_v37, %v1235_v43 }
  0x4a   :  { %v153_v50 = vsub.s32 32, %v152_v45  ;;  %v154_v53 = vshll.u32 %v1243_v48, %v152_v45  ;;  %v157_v58 = vsub.s32 4294967266, %v152_v45  ;;  %v336_v48 = vsel %vm322_vm1, %v333_v16, %v335_v2 }
  0x4b   :  { %v253_v14 = vclz %v945_v0  ;;  %v328_v56 = vsel %vm322_vm1, %v325_v59, %v327_v47  ;;  %v1318_v18 = vmul.u32.u64.low %v1257_v11, %v336_v48  ;;  %v1319_v19 = vmul.u32.u64.high %v1257_v11, %v336_v48, %v1318_v18 }
  0x4c   :  { %v155_v6 = vshrl.u32 %v137_v57, %v153_v50  ;;  %v158_v8 = vadd.s32 127, %v157_v58  ;;  %v1322_v31 = vmul.u32.u64.low %v1257_v11, %v332_v52  ;;  %v1323_v21 = vmul.u32.u64.high %v1257_v11, %v332_v52, %v1322_v31 }
  0x4d   :  { %v946_v20 = vadd.s32 4294967294, %v253_v14  ;;  %vm404_vm4 = vcmp.gt.s32.totalorder %v403_v9, 0  ;;  %v401_v43 = vor.u32 8388608, %v1302_v4  ;;  %v170_v54 = vsel %vm1308_vm3, 0, %v168_v12 }
  0x4e   :  { %v156_v57 = vor.u32 %v155_v6, %v154_v53  ;;  %v159_v17 = vshll.u32 %v158_v8, 23  ;;  %v405_v51 = vsel %vm404_vm4, %v403_v9, 0  ;;  %v241_v23 = vadd.s32 %v1221_v38, %v1231_v42 }
  0x4f   :  { %vm947_vm5 = vcmp.lt.s32.totalorder %v946_v20, 0  ;;  %v407_v32 = vand.u32 31, %v405_v51  ;;  %v344_v36 = vmul.u32 %v1257_v11, %v328_v56  ;;  %vm346_vm6 = vc.u32 %v1319_v19, %v1322_v31 }
  0x50   :  { %v160_v22 = vor.u32 4788187, %v159_v17  ;;  %v163_v49 = vcvt.s32.f32 %v156_v57  ;;  %v256_v35 = vsel %vm947_vm5, 0, %v946_v20  ;;  %v347_v7 = vadd.s32 1, %v1323_v21 }
  0x51   :  { %v257_v37 = vsub.s32 32, %v256_v35  ;;  %v258_v41 = vshll.u32 %v1276_v39, %v256_v35  ;;  %v261_v59 = vsub.s32 4294967266, %v256_v35  ;;  %v174_v45 = vadd.s32 3, %v170_v54 }
  0x52   :  { %v161_v33 = vand.u32 2147483647, %v160_v22  ;;  %v1336_v46 = vshrl.u32 %v405_v51, 5  ;;  %v408_v38 = vsub.s32 32, %v407_v32  ;;  %v348_v16 = vsel %vm346_vm6, %v347_v7, %v1323_v21 }
  0x53   :  { %v259_v42 = vshrl.u32 %v241_v23, %v257_v37  ;;  %v262_v47 = vadd.s32 127, %v261_v59  ;;  %v410_v11 = vshll.u32 %v1091_v61, %v407_v32  ;;  %vm187_vm7 = vcmp.lt.s32.totalorder %v1127_v25, 0 }
  0x54   :  { %v164_v44 = vmul.f32 %v163_v49, %v161_v33  ;;  %v349_v53 = vadd.s32 %v348_v16, %v344_v36  ;;  %v411_v39 = vshrl.u32 %v1092_v63, %v408_v38  ;;  %v413_v58 = vshll.u32 %v1092_v63, %v407_v32 }
  0x55   :  { %vm1345_vm8 = vcmp.le.f32.partialorder %v185_v34, 0.7853982  ;;  %v260_v0 = vor.u32 %v259_v42, %v258_v41  ;;  %v263_v52 = vshll.u32 %v262_v47, 23  ;;  %v414_v2 = vshrl.u32 %v1093_v1, %v408_v38 }
  0x56   :  { %v165_v50 = vxor.u32 2147483648, %v164_v44  ;;  %v416_v4 = vshll.u32 %v1093_v1, %v407_v32  ;;  %v350_v8 = vadd.s32 536870912, %v349_v53  ;;  %v417_v48 = vshrl.u32 %v1094_v3, %v408_v38 }
  0x57   :  { %v419_v9 = vshll.u32 %v1094_v3, %v407_v32  ;;  %v264_v12 = vor.u32 4788187, %v263_v52  ;;  %v267_v14 = vcvt.s32.f32 %v260_v0  ;;  %v412_v56 = vor.u32 %v411_v39, %v410_v11 }
  0x58   :  { %v166_v6 = vsel %vm83_vm14, %v165_v50, %v164_v44  ;;  %v1358_v57 = vshrl.u32 %v350_v8, 30  ;;  %v415_v17 = vor.u32 %v414_v2, %v413_v58  ;;  %v420_v18 = vshrl.u32 %v1095_v5, %v408_v38 }
  0x59   :  { %v169_v34 = vsel %vm1308_vm3, %v1124_v24, %v166_v6  ;;  %v265_v20 = vand.u32 2147483647, %v264_v12  ;;  %v422_v21 = vshll.u32 %v1095_v5, %v407_v32  ;;  %v423_v22 = vshrl.u32 %v1096_v13, %v408_v38 }
  0x5a   :  { %1014 = vcosq.f32 %v169_v34  ;;  %v271_v49 = vsub.s32 4, %v1264_v15  ;;  %v352_v10 = vshll.u32 %v1358_v57, 30  ;;  %v421_v51 = vor.u32 %v420_v18, %v419_v9 }
  0x5b   :  { %1016 = vsinq.f32 %v169_v34  ;;  %vm425_vm9 = vcmp.lt.s32.totalorder %v1336_v46, 1  ;;  %v268_v54 = vmul.f32 %v267_v14, %v265_v20  ;;  %v409_v23 = vshrl.u32 %v1091_v61, %v408_v38 }
  0x5c   :  { %v418_v33 = vor.u32 %v417_v48, %v416_v4  ;;  %v1367_v35 = vshll.u32 %v401_v43, 8  ;;  %v1369_v36 = vsub.s32 %v349_v53, %v352_v10  ;;  %v424_v37 = vor.u32 %v423_v22, %v422_v21 }
  0x5d   :  { %vm427_vm10 = vcmp.lt.s32.totalorder %v1336_v46, 3  ;;  %vm428_vm11 = vcmp.lt.s32.totalorder %v1336_v46, 4  ;;  %v269_v32 = vxor.u32 2147483648, %v268_v54  ;;  %vm426_vm12 = vcmp.lt.s32.totalorder %v1336_v46, 2 }
  0x5e   :  { %v430_v41 = vsel %vm428_vm11, %v418_v33, 2102212464  ;;  %v433_v59 = vsel %vm425_vm9, %v412_v56, %v415_v17  ;;  %v175_v7 = vand.u32 3, %v174_v45  ;;  %v272_v43 = vsel %vm187_vm7, %v271_v49, %v1264_v15 }
  0x5f   :  { %vm291_vm13 = vcmp.lt.s32.totalorder %v1130_v26, 0  ;;  %v355_v44 = vsub.s32 0, %v1369_v36  ;;  %v434_v38 = vsel %vm428_vm11, %v421_v51, 920167782  ;;  %v270_v42 = vsel %vm187_vm7, %v269_v32, %v268_v54 }
  0x60   :  { %v429_v47 = vsel %vm425_vm9, %v409_v23, %v412_v56  ;;  %v431_v45 = vsel %vm427_vm10, %v415_v17, %v430_v41  ;;  %v435_v16 = vsel %vm427_vm10, %v418_v33, %v434_v38  ;;  %vm173_vm14 = vweird.f32 %v1124_v24 }
  0x61   :  { %v273_v15 = vsel %vm1345_vm8, %v1127_v25, %v270_v42  ;;  %v949_v11 = vmin.u32 %v355_v44, %v1369_v36  ;;  %v436_v50 = vsel %vm426_vm12, %v433_v59, %v435_v16  ;;  %v437_v53 = vsel %vm425_vm9, %v415_v17, %v418_v33 }
  0x62   :  { %1018 = vcosq.f32 %v273_v15  ;;  %v438_v39 = vsel %vm428_vm11, %v424_v37, 1326507024  ;;  %v1405_v58 = vmul.u32.u64.low %v1367_v35, %v436_v50  ;;  %v1406_v0 = vmul.u32.u64.high %v1367_v35, %v436_v50, %v1405_v58 }
  0x63   :  { %vm176_vm15 = vcmp.lt.s32.totalorder %v175_v7, 2  ;;  %v274_v52 = vsel %vm1345_vm8, 0, %v272_v43  ;;  %1020 = vsinq.f32 %v273_v15  ;;  %vm1413_vm0 = vcmp.le.f32.partialorder %v289_v55, 0.7853982 }
  0x64   :  { %v357_v4 = vclz %v949_v11  ;;  %vm177_vm1 = vcmp.eq.s32.totalorder %v175_v7, 0  ;;  %vm180_vm2 = vcmp.eq.s32.totalorder %v175_v7, 2  ;;  %v375_v6 = vsub.s32 4, %v1358_v57 }
  0x65   :  { %v439_v8 = vsel %vm427_vm10, %v421_v51, %v438_v39  ;;  %v432_v62 = vsel %vm426_vm12, %v429_v47, %v431_v45  ;;  %v500_v55 = vand.u32 2139095040, %v1133_v27  ;;  %v278_v12 = vadd.s32 3, %v274_v52 }
  0x66   :  { %v950_v48 = vadd.s32 4294967294, %v357_v4  ;;  %v440_v9 = vsel %vm426_vm12, %v437_v53, %v439_v8  ;;  %v345_v14 = vadd.s32 %v1322_v31, %v1319_v19  ;;  %v451_v21 = vadd.s32 1, %v1406_v0 }
  0x67   :  { %v1015_v34 = vpop.eup %1014  ;;  %v1428_v56 = vmul.u32.u64.low %v1367_v35, %v440_v9  ;;  %v1429_v17 = vmul.u32.u64.high %v1367_v35, %v440_v9, %v1428_v56  ;;  %v501_v22 = vshrl.u32 %v500_v55, 23  ;;  %v376_v10 = vsel %vm291_vm13, %v375_v6, %v1358_v57 }
  0x68   :  { %v1017_v18 = vpop.eup %1016  ;;  %v181_v20 = vxor.u32 2147483648, %v1015_v34  ;;  %vm951_vm3 = vcmp.lt.s32.totalorder %v950_v48, 0  ;;  %v448_v51 = vmul.u32 %v1367_v35, %v432_v62  ;;  %v279_v37 = vand.u32 3, %v278_v12 }
  0x69   :  { %v178_v49 = vxor.u32 2147483648, %v1017_v18  ;;  %v360_v46 = vsel %vm951_vm3, 0, %v950_v48  ;;  %vm450_vm4 = vc.u32 %v1429_v17, %v1405_v58  ;;  %v956_v32 = vadd.s32 4294967169, %v501_v22 }
  0x6a   :  { %v182_v19 = vsel %vm180_vm2, %v181_v20, %v1017_v18  ;;  %v361_v31 = vsub.s32 32, %v360_v46  ;;  %v362_v54 = vshll.u32 %v1369_v36, %v360_v46  ;;  %v365_v23 = vsub.s32 4294967266, %v360_v46 }
  0x6b   :  { %v179_v33 = vsel %vm177_vm1, %v1015_v34, %v178_v49  ;;  %v452_v57 = vsel %vm450_vm4, %v451_v21, %v1406_v0  ;;  %v378_v36 = vsel %vm1413_vm0, 0, %v376_v10  ;;  %v507_v38 = vadd.s32 1, %v956_v32 }
  0x6c   :  { %v183_v41 = vsel %vm176_vm15, %v179_v33, %v182_v19  ;;  %v363_v59 = vshrl.u32 %v345_v14, %v361_v31  ;;  %v366_v43 = vadd.s32 127, %v365_v23  ;;  %v453_v44 = vadd.s32 %v452_v57, %v448_v51 }
  0x6d   :  { %v184_v35 = vsel %vm173_vm14, nan, %v183_v41  ;;  %vm284_vm5 = vcmp.eq.s32.totalorder %v279_v37, 2  ;;  %v497_v7 = vand.u32 2147483647, %v1133_v27  ;;  %vm508_vm6 = vcmp.gt.s32.totalorder %v507_v38, 0 }
  0x6e   :  { %v364_v42 = vor.u32 %v363_v59, %v362_v54  ;;  %v367_v47 = vshll.u32 %v366_v43, 23  ;;  %913 = vst [vmem:[#allocation5] sm:$0xff] %v184_v35  ;;  %v454_v45 = vadd.s32 536870912, %v453_v44  ;;  %v382_v50 = vadd.s32 3, %v378_v36 }
  0x6f   :  { %v1019_v16 = vpop.eup %1018  ;;  %v509_v53 = vsel %vm508_vm6, %v507_v38, 0  ;;  %vm281_vm7 = vcmp.eq.s32.totalorder %v279_v37, 0  ;;  %vm277_vm8 = vweird.f32 %v1127_v25  ;;  %vm280_vm9 = vcmp.lt.s32.totalorder %v279_v37, 2 }
  0x70   :  { %v368_v15 = vor.u32 4788187, %v367_v47  ;;  %v371_v11 = vcvt.s32.f32 %v364_v42  ;;  %v1021_v24 = vpop.eup %1020  ;;  %v285_v39 = vxor.u32 2147483648, %v1019_v16  ;;  %v1448_v0 = vshrl.u32 %v454_v45, 30 }
  0x71   :  { %v511_v52 = vand.u32 31, %v509_v53  ;;  %v282_v4 = vxor.u32 2147483648, %v1021_v24  ;;  %v504_v62 = vand.u32 8388607, %v497_v7  ;;  %v1455_v12 = vand.u32 3, %v382_v50 }
  0x72   :  { %v369_v6 = vand.u32 2147483647, %v368_v15  ;;  %v286_v8 = vsel %vm284_vm5, %v285_v39, %v1021_v24  ;;  %v456_v48 = vshll.u32 %v1448_v0, 30  ;;  %v601_v14 = vand.u32 2147483647, %v1136_v28 }
  0x73   :  { %v512_v9 = vsub.s32 32, %v511_v52  ;;  %v283_v55 = vsel %vm281_vm7, %v1019_v16, %v282_v4  ;;  %v449_v18 = vadd.s32 %v1405_v58, %v1429_v17  ;;  %v514_v21 = vshll.u32 %v1091_v61, %v511_v52 }
  0x74   :  { %v372_v34 = vmul.f32 %v371_v11, %v369_v6  ;;  %v287_v56 = vsel %vm280_vm9, %v283_v55, %v286_v8  ;;  %v1460_v20 = vsub.s32 %v453_v44, %v456_v48  ;;  %v517_v10 = vshll.u32 %v1092_v63, %v511_v52 }
  0x75   :  { %v288_v22 = vsel %vm277_vm8, nan, %v287_v56  ;;  %v515_v46 = vshrl.u32 %v1092_v63, %v512_v9  ;;  %v505_v19 = vor.u32 8388608, %v504_v62  ;;  %v510_v31 = vshrl.u32 %v509_v53, 5 }
  0x76   :  { %v373_v49 = vxor.u32 2147483648, %v372_v34  ;;  %v459_v51 = vsub.s32 0, %v1460_v20  ;;  %v518_v54 = vshrl.u32 %v1093_v1, %v512_v9  ;;  %914 = vst [vmem:[#allocation5 + $0x8] sm:$0xff] %v288_v22  ;;  %v520_v17 = vshll.u32 %v1093_v1, %v511_v52 }
  0x77   :  { %v521_v25 = vshrl.u32 %v1094_v3, %v512_v9  ;;  %v523_v23 = vshll.u32 %v1094_v3, %v511_v52  ;;  %v516_v32 = vor.u32 %v515_v46, %v514_v21  ;;  %v604_v41 = vand.u32 2139095040, %v1136_v28 }
  0x78   :  { %v374_v58 = vsel %vm291_vm13, %v373_v49, %v372_v34  ;;  %v953_v37 = vmin.u32 %v459_v51, %v1460_v20  ;;  %v519_v59 = vor.u32 %v518_v54, %v517_v10  ;;  %v524_v43 = vshrl.u32 %v1095_v5, %v512_v9 }
  0x79   :  { %v377_v33 = vsel %vm1413_vm0, %v1130_v26, %v374_v58  ;;  %v526_v57 = vshll.u32 %v1095_v5, %v511_v52  ;;  %v513_v36 = vshrl.u32 %v1091_v61, %v512_v9  ;;  %v545_v44 = vshll.u32 %v505_v19, 8 }
  0x7a   :  { %1022 = vcosq.f32 %v377_v33  ;;  %v461_v35 = vclz %v953_v37  ;;  %v522_v38 = vor.u32 %v521_v25, %v520_v17  ;;  %v525_v42 = vor.u32 %v524_v43, %v523_v23 }
  0x7b   :  { %1024 = vsinq.f32 %v377_v33  ;;  %v527_v2 = vshrl.u32 %v1096_v13, %v512_v9  ;;  %vm529_vm10 = vcmp.lt.s32.totalorder %v510_v31, 1  ;;  %vm531_vm11 = vcmp.lt.s32.totalorder %v510_v31, 3 }
  0x7c   :  { %v954_v47 = vadd.s32 4294967294, %v461_v35  ;;  %vm532_vm12 = vcmp.lt.s32.totalorder %v510_v31, 4  ;;  %v605_v45 = vshrl.u32 %v604_v41, 23  ;;  %vm530_vm13 = vcmp.lt.s32.totalorder %v510_v31, 2 }
  0x7d   :  { %v528_v16 = vor.u32 %v527_v2, %v526_v57  ;;  %v534_v15 = vsel %vm532_vm12, %v522_v38, 2102212464  ;;  %v537_v11 = vsel %vm529_vm10, %v516_v32, %v519_v59  ;;  %v533_v50 = vsel %vm529_vm10, %v513_v36, %v516_v32 }
  0x7e   :  { %vm955_vm14 = vcmp.lt.s32.totalorder %v954_v47, 0  ;;  %v535_v53 = vsel %vm531_vm11, %v519_v59, %v534_v15  ;;  %v538_v24 = vsel %vm532_vm12, %v525_v42, 920167782  ;;  %v541_v4 = vsel %vm529_vm10, %v519_v59, %v522_v38 }
  0x7f   :  { %v464_v39 = vsel %vm955_vm14, 0, %v954_v47  ;;  %v539_v52 = vsel %vm531_vm11, %v522_v38, %v538_v24  ;;  %v542_v6 = vsel %vm532_vm12, %v528_v16, 1326507024  ;;  %vm381_vm15 = vweird.f32 %v1130_v26 }
  0x80   :  { %v465_v8 = vsub.s32 32, %v464_v39  ;;  %v466_v48 = vshll.u32 %v1460_v20, %v464_v39  ;;  %v469_v62 = vsub.s32 4294967266, %v464_v39  ;;  %v540_v9 = vsel %vm530_vm13, %v537_v11, %v539_v52 }
  0x81   :  { %v536_v55 = vsel %vm530_vm13, %v533_v50, %v535_v53  ;;  %v543_v34 = vsel %vm531_vm11, %v525_v42, %v542_v6  ;;  %v1490_v56 = vmul.u32.u64.low %v545_v44, %v540_v9  ;;  %v1491_v21 = vmul.u32.u64.high %v545_v44, %v540_v9, %v1490_v56 }
  0x82   :  { %v467_v22 = vshrl.u32 %v449_v18, %v465_v8  ;;  %v470_v49 = vadd.s32 127, %v469_v62  ;;  %v544_v46 = vsel %vm530_vm13, %v541_v4, %v543_v34  ;;  %v960_v10 = vadd.s32 4294967169, %v605_v45 }
  0x83   :  { %vm1497_vm0 = vcmp.le.f32.partialorder %v393_v60, 0.7853982  ;;  %v479_v51 = vsub.s32 4, %v1448_v0  ;;  %v1502_v19 = vmul.u32.u64.low %v545_v44, %v544_v46  ;;  %v1503_v54 = vmul.u32.u64.high %v545_v44, %v544_v46, %v1502_v19 }
  0x84   :  { %vm395_vm1 = vcmp.lt.s32.totalorder %v1227_v40, 0  ;;  %v468_v58 = vor.u32 %v467_v22, %v466_v48  ;;  %v471_v17 = vshll.u32 %v470_v49, 23  ;;  %v611_v18 = vadd.s32 1, %v960_v10 }
  0x85   :  { %vm385_vm2 = vcmp.eq.s32.totalorder %v1455_v12, 0  ;;  %v552_v31 = vmul.u32 %v545_v44, %v536_v55  ;;  %v555_v25 = vadd.s32 1, %v1491_v21  ;;  %v608_v60 = vand.u32 8388607, %v601_v14 }
  0x86   :  { %vm388_vm3 = vcmp.eq.s32.totalorder %v1455_v12, 2  ;;  %v472_v33 = vor.u32 4788187, %v471_v17  ;;  %v475_v37 = vcvt.s32.f32 %v468_v58  ;;  %vm612_vm4 = vcmp.gt.s32.totalorder %v611_v18, 0 }
  0x87   :  { %v1023_v23 = vpop.eup %1022  ;;  %v480_v59 = vsel %vm395_vm1, %v479_v51, %v1448_v0  ;;  %vm554_vm5 = vc.u32 %v1503_v54, %v1490_v56  ;;  %v613_v43 = vsel %vm612_vm4, %v611_v18, 0  ;;  %vm384_vm6 = vcmp.lt.s32.totalorder %v1455_v12, 2 }
  0x88   :  { %v1025_v32 = vpop.eup %1024  ;;  %v389_v41 = vxor.u32 2147483648, %v1023_v23  ;;  %v473_v35 = vand.u32 2147483647, %v472_v33  ;;  %v556_v36 = vsel %vm554_vm5, %v555_v25, %v1491_v21  ;;  %v609_v42 = vor.u32 8388608, %v608_v60 }
  0x89   :  { %v386_v57 = vxor.u32 2147483648, %v1025_v32  ;;  %v557_v38 = vadd.s32 %v556_v36, %v552_v31  ;;  %v615_v2 = vand.u32 31, %v613_v43  ;;  %v482_v0 = vsel %vm1497_vm0, 0, %v480_v59 }
  0x8a   :  { %v390_v44 = vsel %vm388_vm3, %v389_v41, %v1025_v32  ;;  %v476_v45 = vmul.f32 %v475_v37, %v473_v35  ;;  %v708_v16 = vand.u32 2139095040, %v1139_v29  ;;  %v614_v50 = vshrl.u32 %v613_v43, 5 }
  0x8b   :  { %v387_v47 = vsel %vm385_vm2, %v1023_v23, %v386_v57  ;;  %v558_v11 = vadd.s32 536870912, %v557_v38  ;;  %v616_v53 = vsub.s32 32, %v615_v2  ;;  %v618_v52 = vshll.u32 %v1091_v61, %v615_v2 }
  0x8c   :  { %v391_v15 = vsel %vm384_vm6, %v387_v47, %v390_v44  ;;  %v477_v39 = vxor.u32 2147483648, %v476_v45  ;;  %v621_v4 = vshll.u32 %v1092_v63, %v615_v2  ;;  %v624_v48 = vshll.u32 %v1093_v1, %v615_v2 }
  0x8d   :  { %v392_v24 = vsel %vm381_vm15, nan, %v391_v15  ;;  %v1527_v12 = vshrl.u32 %v558_v11, 30  ;;  %v619_v6 = vshrl.u32 %v1092_v63, %v616_v53  ;;  %v622_v8 = vshrl.u32 %v1093_v1, %v616_v53 }
  0x8e   :  { %915 = vst [vmem:[#allocation5 + $0x10] sm:$0xff] %v392_v24  ;;  %v478_v62 = vsel %vm395_vm1, %v477_v39, %v476_v45  ;;  %v625_v26 = vshrl.u32 %v1094_v3, %v616_v53  ;;  %v627_v9 = vshll.u32 %v1094_v3, %v615_v2  ;;  %v628_v55 = vshrl.u32 %v1095_v5, %v616_v53 }
  0x8f   :  { %v481_v34 = vsel %vm1497_vm0, %v1227_v40, %v478_v62  ;;  %v560_v21 = vshll.u32 %v1527_v12, 30  ;;  %v617_v22 = vshrl.u32 %v1091_v61, %v616_v53  ;;  %vm633_vm7 = vcmp.lt.s32.totalorder %v614_v50, 1 }
  0x90   :  { %1026 = vcosq.f32 %v481_v34  ;;  %v620_v49 = vor.u32 %v619_v6, %v618_v52  ;;  %v623_v46 = vor.u32 %v622_v8, %v621_v4  ;;  %v629_v10 = vor.u32 %v628_v55, %v627_v9 }
  0x91   :  { %1028 = vsinq.f32 %v481_v34  ;;  %v1542_v51 = vsub.s32 %v557_v38, %v560_v21  ;;  %v626_v19 = vor.u32 %v625_v26, %v624_v48  ;;  %v630_v58 = vshll.u32 %v1095_v5, %v615_v2 }
  0x92   :  { %v486_v17 = vadd.s32 3, %v482_v0  ;;  %v631_v18 = vshrl.u32 %v1096_v13, %v616_v53  ;;  %vm635_vm8 = vcmp.lt.s32.totalorder %v614_v50, 3  ;;  %vm636_vm9 = vcmp.lt.s32.totalorder %v614_v50, 4 }
  0x93   :  { %v563_v20 = vsub.s32 0, %v1542_v51  ;;  %vm634_vm10 = vcmp.lt.s32.totalorder %v614_v50, 2  ;;  %v638_v31 = vsel %vm636_vm9, %v626_v19, 2102212464  ;;  %v649_v25 = vshll.u32 %v609_v42, 8 }
  0x94   :  { %v632_v60 = vor.u32 %v631_v18, %v630_v58  ;;  %v641_v23 = vsel %vm633_vm7, %v620_v49, %v623_v46  ;;  %v642_v33 = vsel %vm636_vm9, %v629_v10, 920167782  ;;  %v709_v37 = vshrl.u32 %v708_v16, 23 }
  0x95   :  { %v957_v32 = vmin.u32 %v563_v20, %v1542_v51  ;;  %v637_v41 = vsel %vm633_vm7, %v617_v22, %v620_v49  ;;  %v643_v59 = vsel %vm635_vm8, %v626_v19, %v642_v33  ;;  %v639_v43 = vsel %vm635_vm8, %v623_v46, %v638_v31 }
  0x96   :  { %v644_v57 = vsel %vm634_vm10, %v641_v23, %v643_v59  ;;  %v645_v35 = vsel %vm633_vm7, %v623_v46, %v626_v19  ;;  %v646_v36 = vsel %vm636_vm9, %v632_v60, 1326507024  ;;  %v487_v44 = vand.u32 3, %v486_v17 }
  0x97   :  { %v565_v38 = vclz %v957_v32  ;;  %v647_v42 = vsel %vm635_vm8, %v629_v10, %v646_v36  ;;  %v1555_v2 = vmul.u32.u64.low %v649_v25, %v644_v57  ;;  %v1556_v47 = vmul.u32.u64.high %v649_v25, %v644_v57, %v1555_v2 }
  0x98   :  { %v964_v45 = vadd.s32 4294967169, %v709_v37  ;;  %vm485_vm11 = vweird.f32 %v1227_v40  ;;  %v640_v16 = vsel %vm634_vm10, %v637_v41, %v639_v43  ;;  %v648_v15 = vsel %vm634_vm10, %v645_v35, %v647_v42 }
  0x99   :  { %v958_v0 = vadd.s32 4294967294, %v565_v38  ;;  %vm499_vm12 = vcmp.lt.s32.totalorder %v1133_v27, 0  ;;  %v1563_v11 = vmul.u32.u64.low %v649_v25, %v648_v15  ;;  %v1564_v53 = vmul.u32.u64.high %v649_v25, %v648_v15, %v1563_v11 }
  0x9a   :  { %v715_v24 = vadd.s32 1, %v964_v45  ;;  %vm492_vm13 = vcmp.eq.s32.totalorder %v487_v44, 2  ;;  %v553_v39 = vadd.s32 %v1490_v56, %v1503_v54  ;;  %v583_v52 = vsub.s32 4, %v1527_v12 }
  0x9b   :  { %vm959_vm14 = vcmp.lt.s32.totalorder %v958_v0, 0  ;;  %v656_v6 = vmul.u32 %v649_v25, %v640_v16  ;;  %v659_v8 = vadd.s32 1, %v1556_v47  ;;  %vm1572_vm0 = vcmp.le.f32.partialorder %v497_v7, 0.7853982 }
  0x9c   :  { %v568_v4 = vsel %vm959_vm14, 0, %v958_v0  ;;  %vm716_vm15 = vcmp.gt.s32.totalorder %v715_v24, 0  ;;  %vm488_vm1 = vcmp.lt.s32.totalorder %v487_v44, 2  ;;  %vm489_vm2 = vcmp.eq.s32.totalorder %v487_v44, 0 }
  0x9d   :  { %v1027_v50 = vpop.eup %1026  ;;  %v569_v62 = vsub.s32 32, %v568_v4  ;;  %v570_v26 = vshll.u32 %v1542_v51, %v568_v4  ;;  %v573_v9 = vsub.s32 4294967266, %v568_v4  ;;  %v717_v56 = vsel %vm716_vm15, %v715_v24, 0 }
  0x9e   :  { %v1029_v54 = vpop.eup %1028  ;;  %v493_v55 = vxor.u32 2147483648, %v1027_v50  ;;  %vm658_vm3 = vc.u32 %v1564_v53, %v1555_v2  ;;  %v705_v10 = vand.u32 2147483647, %v1139_v29  ;;  %v719_v51 = vand.u32 31, %v717_v56 }
  0x9f   :  { %v490_v34 = vxor.u32 2147483648, %v1029_v54  ;;  %v571_v21 = vshrl.u32 %v553_v39, %v569_v62  ;;  %v574_v22 = vadd.s32 127, %v573_v9  ;;  %v660_v7 = vsel %vm658_vm3, %v659_v8, %v1556_v47 }
  0xa0   :  { %v494_v49 = vsel %vm492_vm13, %v493_v55, %v1029_v54  ;;  %v661_v46 = vadd.s32 %v660_v7, %v656_v6  ;;  %v584_v18 = vsel %vm499_vm12, %v583_v52, %v1527_v12  ;;  %v718_v25 = vshrl.u32 %v717_v56, 5 }
  0xa1   :  { %v491_v19 = vsel %vm489_vm2, %v1027_v50, %v490_v34  ;;  %v572_v58 = vor.u32 %v571_v21, %v570_v26  ;;  %v575_v17 = vshll.u32 %v574_v22, 23  ;;  %v720_v60 = vsub.s32 32, %v719_v51 }
  0xa2   :  { %v495_v20 = vsel %vm488_vm1, %v491_v19, %v494_v49  ;;  %v662_v31 = vadd.s32 536870912, %v661_v46  ;;  %v722_v32 = vshll.u32 %v1091_v61, %v719_v51  ;;  %v725_v43 = vshll.u32 %v1092_v63, %v719_v51 }
  0xa3   :  { %v496_v23 = vsel %vm485_vm11, nan, %v495_v20  ;;  %v576_v33 = vor.u32 4788187, %v575_v17  ;;  %v579_v37 = vcvt.s32.f32 %v572_v58  ;;  %v723_v59 = vshrl.u32 %v1092_v63, %v720_v60 }
  0xa4   :  { %v1589_v41 = vshrl.u32 %v662_v31, 30  ;;  %v726_v12 = vshrl.u32 %v1093_v1, %v720_v60  ;;  %916 = vst [vmem:[#allocation5 + $0x18] sm:$0xff] %v496_v23  ;;  %v728_v35 = vshll.u32 %v1093_v1, %v719_v51  ;;  %v729_v36 = vshrl.u32 %v1094_v3, %v720_v60 }
  0xa5   :  { %v577_v57 = vand.u32 2147483647, %v576_v33  ;;  %v731_v40 = vshll.u32 %v1094_v3, %v719_v51  ;;  %v586_v44 = vsel %vm1572_vm0, 0, %v584_v18  ;;  %v712_v42 = vand.u32 8388607, %v705_v10 }
  0xa6   :  { %v664_v38 = vshll.u32 %v1589_v41, 30  ;;  %vm737_vm4 = vcmp.lt.s32.totalorder %v718_v25, 1  ;;  %v721_v45 = vshrl.u32 %v1091_v61, %v720_v60  ;;  %v732_v0 = vshrl.u32 %v1095_v5, %v720_v60 }
  0xa7   :  { %v580_v47 = vmul.f32 %v579_v37, %v577_v57  ;;  %v734_v16 = vshll.u32 %v1095_v5, %v719_v51  ;;  %v724_v11 = vor.u32 %v723_v59, %v722_v32  ;;  %v727_v24 = vor.u32 %v726_v12, %v725_v43 }
  0xa8   :  { %v665_v15 = vsub.s32 %v661_v46, %v664_v38  ;;  %v735_v39 = vshrl.u32 %v1096_v13, %v720_v60  ;;  %v730_v4 = vor.u32 %v729_v36, %v728_v35  ;;  %v733_v6 = vor.u32 %v732_v0, %v731_v40 }
  0xa9   :  { %v581_v52 = vxor.u32 2147483648, %v580_v47  ;;  %vm740_vm5 = vcmp.lt.s32.totalorder %v718_v25, 4  ;;  %v713_v50 = vor.u32 8388608, %v712_v42  ;;  %vm739_vm6 = vcmp.lt.s32.totalorder %v718_v25, 3 }
  0xaa   :  { %v667_v8 = vsub.s32 0, %v665_v15  ;;  %v812_v62 = vand.u32 2139095040, %v1142_v30  ;;  %v736_v9 = vor.u32 %v735_v39, %v734_v16  ;;  %v742_v56 = vsel %vm740_vm5, %v730_v4, 2102212464 }
  0xab   :  { %v582_v26 = vsel %vm499_vm12, %v581_v52, %v580_v47  ;;  %v746_v54 = vsel %vm740_vm5, %v733_v6, 920167782  ;;  %vm738_vm7 = vcmp.lt.s32.totalorder %v718_v25, 2  ;;  %v745_v21 = vsel %vm737_vm4, %v724_v11, %v727_v24 }
  0xac   :  { %v585_v55 = vsel %vm1572_vm0, %v1133_v27, %v582_v26  ;;  %v961_v34 = vmin.u32 %v667_v8, %v665_v15  ;;  %v741_v22 = vsel %vm737_vm4, %v721_v45, %v724_v11  ;;  %v743_v7 = vsel %vm739_vm6, %v727_v24, %v742_v56 }
  0xad   :  { %1030 = vcosq.f32 %v585_v55  ;;  %v747_v49 = vsel %vm739_vm6, %v730_v4, %v746_v54  ;;  %v749_v51 = vsel %vm737_vm4, %v727_v24, %v730_v4  ;;  %v590_v19 = vadd.s32 3, %v586_v44 }
  0xae   :  { %1032 = vsinq.f32 %v585_v55  ;;  %v669_v46 = vclz %v961_v34  ;;  %v748_v58 = vsel %vm738_vm7, %v745_v21, %v747_v49  ;;  %v750_v48 = vsel %vm740_vm5, %v736_v9, 1326507024 }
  0xaf   :  { %v753_v17 = vshll.u32 %v713_v50, 8  ;;  %v744_v20 = vsel %vm738_vm7, %v741_v22, %v743_v7  ;;  %v751_v31 = vsel %vm739_vm6, %v733_v6, %v750_v48  ;;  %v813_v60 = vshrl.u32 %v812_v62, 23 }
  0xb0   :  { %v962_v18 = vadd.s32 4294967294, %v669_v46  ;;  %v657_v23 = vadd.s32 %v1555_v2, %v1564_v53  ;;  %v752_v33 = vsel %vm738_vm7, %v749_v51, %v751_v31  ;;  %v591_v42 = vand.u32 3, %v590_v19 }
  0xb1   :  { %v1626_v37 = vmul.u32.u64.low %v753_v17, %v748_v58  ;;  %v1627_v32 = vmul.u32.u64.high %v753_v17, %v748_v58, %v1626_v37  ;;  %v1630_v59 = vmul.u32.u64.low %v753_v17, %v752_v33  ;;  %v1631_v43 = vmul.u32.u64.high %v753_v17, %v752_v33, %v1630_v59 }
  0xb2   :  { %vm963_vm8 = vcmp.lt.s32.totalorder %v962_v18, 0  ;;  %v968_v12 = vadd.s32 4294967169, %v813_v60  ;;  %v760_v35 = vmul.u32 %v753_v17, %v744_v20  ;;  %v687_v47 = vsub.s32 4, %v1589_v41 }
  0xb3   :  { %v672_v57 = vsel %vm963_vm8, 0, %v962_v18  ;;  %v763_v2 = vadd.s32 1, %v1627_v32  ;;  %vm762_vm9 = vc.u32 %v1631_v43, %v1626_v37  ;;  %vm589_vm10 = vweird.f32 %v1133_v27 }
  0xb4   :  { %v673_v36 = vsub.s32 32, %v672_v57  ;;  %v674_v40 = vshll.u32 %v665_v15, %v672_v57  ;;  %v677_v44 = vsub.s32 4294967266, %v672_v57  ;;  %v819_v38 = vadd.s32 1, %v968_v12 }
  0xb5   :  { %v764_v45 = vsel %vm762_vm9, %v763_v2, %v1627_v32  ;;  %v809_v0 = vand.u32 2147483647, %v1142_v30  ;;  %vm596_vm12 = vcmp.eq.s32.totalorder %v591_v42, 2  ;;  %vm1642_vm13 = vcmp.le.f32.partialorder %v601_v14, 0.7853982 }
  0xb6   :  { %v675_v53 = vshrl.u32 %v657_v23, %v673_v36  ;;  %v678_v25 = vadd.s32 127, %v677_v44  ;;  %vm820_vm11 = vcmp.gt.s32.totalorder %v819_v38, 0  ;;  %v765_v11 = vadd.s32 %v764_v45, %v760_v35 }
  0xb7   :  { %v821_v24 = vsel %vm820_vm11, %v819_v38, 0  ;;  %vm603_vm14 = vcmp.lt.s32.totalorder %v1136_v28, 0  ;;  %vm592_vm15 = vcmp.lt.s32.totalorder %v591_v42, 2  ;;  %vm593_vm0 = vcmp.eq.s32.totalorder %v591_v42, 0 }
  0xb8   :  { %v676_v16 = vor.u32 %v675_v53, %v674_v40  ;;  %v679_v15 = vshll.u32 %v678_v25, 23  ;;  %v823_v52 = vand.u32 31, %v821_v24  ;;  %v688_v50 = vsel %vm603_vm14, %v687_v47, %v1589_v41 }
  0xb9   :  { %v766_v62 = vadd.s32 536870912, %v765_v11  ;;  %v816_v34 = vand.u32 8388607, %v809_v0  ;;  %v690_v22 = vsel %vm1642_vm13, 0, %v688_v50  ;;  %v822_v7 = vshrl.u32 %v821_v24, 5 }
  0xba   :  { %v1031_v4 = vpop.eup %1030  ;;  %v680_v6 = vor.u32 4788187, %v679_v15  ;;  %v683_v8 = vcvt.s32.f32 %v676_v16  ;;  %v824_v56 = vsub.s32 32, %v823_v52  ;;  %v826_v41 = vshll.u32 %v1091_v61, %v823_v52 }
  0xbb   :  { %v1033_v26 = vpop.eup %1032  ;;  %v597_v9 = vxor.u32 2147483648, %v1031_v4  ;;  %v1650_v55 = vshrl.u32 %v766_v62, 30  ;;  %v829_v48 = vshll.u32 %v1092_v63, %v823_v52  ;;  %v832_v18 = vshll.u32 %v1093_v1, %v823_v52 }
  0xbc   :  { %v594_v14 = vxor.u32 2147483648, %v1033_v26  ;;  %v681_v54 = vand.u32 2147483647, %v680_v6  ;;  %v827_v19 = vshrl.u32 %v1092_v63, %v824_v56  ;;  %v830_v17 = vshrl.u32 %v1093_v1, %v824_v56 }
  0xbd   :  { %v598_v21 = vsel %vm596_vm12, %v597_v9, %v1033_v26  ;;  %v768_v51 = vshll.u32 %v1650_v55, 30  ;;  %v833_v23 = vshrl.u32 %v1094_v3, %v824_v56  ;;  %v817_v33 = vor.u32 8388608, %v816_v34 }
  0xbe   :  { %v595_v49 = vsel %vm593_vm0, %v1031_v4, %v594_v14  ;;  %v684_v46 = vmul.f32 %v683_v8, %v681_v54  ;;  %v825_v32 = vshrl.u32 %v1091_v61, %v824_v56  ;;  %v835_v59 = vshll.u32 %v1094_v3, %v823_v52 }
  0xbf   :  { %v599_v58 = vsel %vm592_vm15, %v595_v49, %v598_v21  ;;  %v769_v60 = vsub.s32 %v765_v11, %v768_v51  ;;  %v836_v12 = vshrl.u32 %v1095_v5, %v824_v56  ;;  %v828_v1 = vor.u32 %v827_v19, %v826_v41 }
  0xc0   :  { %v600_v20 = vsel %vm589_vm10, nan, %v599_v58  ;;  %v685_v31 = vxor.u32 2147483648, %v684_v46  ;;  %v838_v27 = vshll.u32 %v1095_v5, %v823_v52  ;;  %v831_v36 = vor.u32 %v830_v17, %v829_v48 }
  0xc1   :  { %917 = vst [vmem:[#allocation5 + $0x20] sm:$0xff] %v600_v20  ;;  %v771_v57 = vsub.s32 0, %v769_v60  ;;  %v837_v40 = vor.u32 %v836_v12, %v835_v59  ;;  %v839_v61 = vshrl.u32 %v1096_v13, %v824_v56  ;;  %v834_v44 = vor.u32 %v833_v23, %v832_v18 }
  0xc2   :  { %v686_v63 = vsel %vm603_vm14, %v685_v31, %v684_v46  ;;  %vm841_vm1 = vcmp.lt.s32.totalorder %v822_v7, 1  ;;  %vm843_vm2 = vcmp.lt.s32.totalorder %v822_v7, 3  ;;  %vm844_vm3 = vcmp.lt.s32.totalorder %v822_v7, 4 }
  0xc3   :  { %v689_v35 = vsel %vm1642_vm13, %v1136_v28, %v686_v63  ;;  %v965_v3 = vmin.u32 %v771_v57, %v769_v60  ;;  %v840_v38 = vor.u32 %v839_v61, %v838_v27  ;;  %vm842_vm4 = vcmp.lt.s32.totalorder %v822_v7, 2 }
  0xc4   :  { %1034 = vcosq.f32 %v689_v35  ;;  %v857_v2 = vshll.u32 %v817_v33, 8  ;;  %v694_v5 = vadd.s32 3, %v690_v22  ;;  %v846_v53 = vsel %vm844_vm3, %v834_v44, 2102212464 }
  0xc5   :  { %1036 = vsinq.f32 %v689_v35  ;;  %v773_v42 = vclz %v965_v3  ;;  %v849_v25 = vsel %vm841_vm1, %v828_v1, %v831_v36  ;;  %v850_v47 = vsel %vm844_vm3, %v837_v40, 920167782 }
  0xc6   :  { %v761_v45 = vadd.s32 %v1626_v37, %v1631_v43  ;;  %v851_v16 = vsel %vm843_vm2, %v834_v44, %v850_v47  ;;  %v853_v15 = vsel %vm841_vm1, %v831_v36, %v834_v44  ;;  %v845_v11 = vsel %vm841_vm1, %v825_v32, %v828_v1 }
  0xc7   :  { %v966_v13 = vadd.s32 4294967294, %v773_v42  ;;  %v847_v24 = vsel %vm843_vm2, %v831_v36, %v846_v53  ;;  %v852_v39 = vsel %vm842_vm4, %v849_v25, %v851_v16  ;;  %v854_v52 = vsel %vm844_vm3, %v840_v38, 1326507024 }
  0xc8   :  { %v855_v4 = vsel %vm843_vm2, %v837_v40, %v854_v52  ;;  %v1686_v6 = vmul.u32.u64.low %v857_v2, %v852_v39  ;;  %v1687_v8 = vmul.u32.u64.high %v857_v2, %v852_v39, %v1686_v6  ;;  %v848_v9 = vsel %vm842_vm4, %v845_v11, %v847_v24 }
  0xc9   :  { %vm967_vm5 = vcmp.lt.s32.totalorder %v966_v13, 0  ;;  %v856_v37 = vsel %vm842_vm4, %v853_v15, %v855_v4  ;;  %v695_v56 = vand.u32 3, %v694_v5  ;;  %v864_v41 = vmul.u32 %v857_v2, %v848_v9 }
  0xca   :  { %v776_v50 = vsel %vm967_vm5, 0, %v966_v13  ;;  %v1691_v14 = vmul.u32.u64.low %v857_v2, %v856_v37  ;;  %v1692_v54 = vmul.u32.u64.high %v857_v2, %v856_v37, %v1691_v14  ;;  %v867_v22 = vadd.s32 1, %v1687_v8 }
  0xcb   :  { %v777_v43 = vsub.s32 32, %v776_v50  ;;  %v778_v62 = vshll.u32 %v769_v60, %v776_v50  ;;  %v781_v26 = vsub.s32 4294967266, %v776_v50  ;;  %vm697_vm6 = vcmp.eq.s32.totalorder %v695_v56, 0 }
  0xcc   :  { %vm700_vm7 = vcmp.eq.s32.totalorder %v695_v56, 2  ;;  %vm866_vm8 = vc.u32 %v1692_v54, %v1686_v6  ;;  %vm696_vm9 = vcmp.lt.s32.totalorder %v695_v56, 2  ;;  %vm693_vm10 = vweird.f32 %v1136_v28 }
  0xcd   :  { %v779_v34 = vshrl.u32 %v761_v45, %v777_v43  ;;  %v782_v21 = vadd.s32 127, %v781_v26  ;;  %v868_v17 = vsel %vm866_vm8, %v867_v22, %v1687_v8  ;;  %vm707_vm11 = vcmp.lt.s32.totalorder %v1139_v29, 0 }
  0xce   :  { %v869_v20 = vadd.s32 %v868_v17, %v864_v41  ;;  %v791_v63 = vsub.s32 4, %v1650_v55  ;;  %vm706_vm12 = vcmp.le.f32.partialorder %v705_v10, 0.7853982  ;;  %v865_v10 = vadd.s32 %v1686_v6, %v1692_v54 }
  0xcf   :  { %v780_v49 = vor.u32 %v779_v34, %v778_v62  ;;  %v783_v46 = vshll.u32 %v782_v21, 23  ;;  %vm797_vm1 = vweird.f32 %v1139_v29  ;;  %vm811_vm2 = vcmp.lt.s32.totalorder %v1142_v30, 0 }
  0xd0   :  { %v870_v33 = vadd.s32 536870912, %v869_v20  ;;  %v792_v28 = vsel %vm707_vm11, %v791_v63, %v1650_v55  ;;  %vm810_vm3 = vcmp.le.f32.partialorder %v809_v0, 0.7853982 }
  0xd1   :  { %v1035_v51 = vpop.eup %1034  ;;  %v784_v7 = vor.u32 4788187, %v783_v46  ;;  %v787_v48 = vcvt.s32.f32 %v780_v49  ;;  %v794_v3 = vsel %vm706_vm12, 0, %v792_v28 }
  0xd2   :  { %v1037_v19 = vpop.eup %1036  ;;  %v701_v58 = vxor.u32 2147483648, %v1035_v51  ;;  %v871_v57 = vshrl.u32 %v870_v33, 30  ;;  %v798_v38 = vadd.s32 3, %v794_v3 }
  0xd3   :  { %v698_v18 = vxor.u32 2147483648, %v1037_v19  ;;  %v785_v60 = vand.u32 2147483647, %v784_v7 }
  0xd4   :  { %v702_v31 = vsel %vm700_vm7, %v701_v58, %v1037_v19  ;;  %v872_v27 = vshll.u32 %v871_v57, 30  ;;  %v799_v5 = vand.u32 3, %v798_v38  ;;  %v895_v9 = vsub.s32 4, %v871_v57 }
  0xd5   :  { %v699_v23 = vsel %vm697_vm6, %v1035_v51, %v698_v18  ;;  %v788_v59 = vmul.f32 %v787_v48, %v785_v60  ;;  %vm901_vm7 = vweird.f32 %v1142_v30 }
  0xd6   :  { %v703_v32 = vsel %vm696_vm9, %v699_v23, %v702_v31  ;;  %v873_v40 = vsub.s32 %v869_v20, %v872_v27  ;;  %vm804_vm14 = vcmp.eq.s32.totalorder %v799_v5, 2  ;;  %vm801_vm15 = vcmp.eq.s32.totalorder %v799_v5, 0 }
  0xd7   :  { %v704_v12 = vsel %vm693_vm10, nan, %v703_v32  ;;  %v789_v1 = vxor.u32 2147483648, %v788_v59  ;;  %vm800_vm0 = vcmp.lt.s32.totalorder %v799_v5, 2  ;;  %v896_v54 = vsel %vm811_vm2, %v895_v9, %v871_v57 }
  0xd8   :  { %918 = vst [vmem:[#allocation5 + $0x28] sm:$0xff] %v704_v12  ;;  %v875_v61 = vsub.s32 0, %v873_v40  ;;  %v898_v34 = vsel %vm810_vm3, 0, %v896_v54 }
  0xd9   :  { %v790_v35 = vsel %vm707_vm11, %v789_v1, %v788_v59  ;;  %v902_v21 = vadd.s32 3, %v898_v34 }
  0xda   :  { %v793_v36 = vsel %vm706_vm12, %v1139_v29, %v790_v35  ;;  %v969_v44 = vmin.u32 %v875_v61, %v873_v40 }
  0xdb   :  { %1038 = vcosq.f32 %v793_v36  ;;  %v903_v22 = vand.u32 3, %v902_v21 }
  0xdc   :  { %1040 = vsinq.f32 %v793_v36  ;;  %v877_v42 = vclz %v969_v44 }
  0xdd   :  { %vm908_vm4 = vcmp.eq.s32.totalorder %v903_v22, 2  ;;  %vm905_vm5 = vcmp.eq.s32.totalorder %v903_v22, 0  ;;  %vm904_vm6 = vcmp.lt.s32.totalorder %v903_v22, 2 }
  0xde   :  { %v970_v2 = vadd.s32 4294967294, %v877_v42 }
  0xe0   :  { %vm971_vm13 = vcmp.lt.s32.totalorder %v970_v2, 0 }
  0xe1   :  { %v880_v53 = vsel %vm971_vm13, 0, %v970_v2 }
  0xe2   :  { %v881_v25 = vsub.s32 32, %v880_v53  ;;  %v882_v47 = vshll.u32 %v873_v40, %v880_v53  ;;  %v885_v45 = vsub.s32 4294967266, %v880_v53 }
  0xe4   :  { %v883_v13 = vshrl.u32 %v865_v10, %v881_v25  ;;  %v886_v16 = vadd.s32 127, %v885_v45 }
  0xe6   :  { %v884_v39 = vor.u32 %v883_v13, %v882_v47  ;;  %v887_v52 = vshll.u32 %v886_v16, 23 }
  0xe8   :  { %v1039_v55 = vpop.eup %1038  ;;  %v888_v8 = vor.u32 4788187, %v887_v52  ;;  %v891_v50 = vcvt.s32.f32 %v884_v39 }
  0xe9   :  { %v1041_v15 = vpop.eup %1040  ;;  %v805_v11 = vxor.u32 2147483648, %v1039_v55 }
  0xea   :  { %v802_v24 = vxor.u32 2147483648, %v1041_v15  ;;  %v889_v62 = vand.u32 2147483647, %v888_v8 }
  0xeb   :  { %v806_v4 = vsel %vm804_vm14, %v805_v11, %v1041_v15 }
  0xec   :  { %v803_v6 = vsel %vm801_vm15, %v1039_v55, %v802_v24  ;;  %v892_v26 = vmul.f32 %v891_v50, %v889_v62 }
  0xed   :  { %v807_v37 = vsel %vm800_vm0, %v803_v6, %v806_v4 }
  0xee   :  { %v808_v43 = vsel %vm797_vm1, nan, %v807_v37  ;;  %v893_v56 = vxor.u32 2147483648, %v892_v26 }
  0xef   :  { %919 = vst [vmem:[#allocation5 + $0x30] sm:$0xff] %v808_v43 }
  0xf0   :  { %v894_v14 = vsel %vm811_vm2, %v893_v56, %v892_v26 }
  0xf1   :  { %v897_v29 = vsel %vm810_vm3, %v1142_v30, %v894_v14 }
  0xf2   :  { %1042 = vcosq.f32 %v897_v29 }
  0xf3   :  { %1044 = vsinq.f32 %v897_v29 }
  0xff   :  { %v1043_v41 = vpop.eup %1042 }
 0x100   :  { %v1045_v49 = vpop.eup %1044  ;;  %v909_v46 = vxor.u32 2147483648, %v1043_v41 }
 0x101   :  { %v906_v51 = vxor.u32 2147483648, %v1045_v49 }
 0x102   :  { %v910_v0 = vsel %vm908_vm4, %v909_v46, %v1045_v49 }
 0x103   :  { %v907_v19 = vsel %vm905_vm5, %v1043_v41, %v906_v51 }
 0x104   :  { %v911_v58 = vsel %vm904_vm6, %v907_v19, %v910_v0 }
 0x105   :  { %v912_v7 = vsel %vm901_vm7, nan, %v911_v58 }
 0x106   :  { %920 = vst [vmem:[#allocation5 + $0x38] sm:$0xff] %v912_v7 }
 0x107   :  { %1077 = shalt.err (!%p1074_p9)
}
 0x108   :  { %s1098_s18 = smov 128   ;;  %s1099_s19 = smov 8  }
 0x109   :  { %932 = dma.vmem_to_hbm [thread:$0]  %s927_s16, 1024, %s1716_s2, [#allocation4], %s1098_s18, %s1098_s18, %s1099_s19  }
 0x10a   :  { %1088 = dma.done.wait [#allocation4], 1024  }
 0x10b   :  { %1089 = vsyncadd [#allocation4], 4294966272 }
 0x10c   :  { %936 = vsyncpa [#allocation3], 1 }
 0x10d   :  { %937 = vsyncpa [#allocation4], 1 }

</bundles_post_ra>
